<compile_context>
chip_gen: v7x
topology: tpu7x:2x2x1
jax: 0.10.0
libtpu: 0.0.40
codegen_flags: <defaults>
</compile_context>

<pallas_src>
import functools

import jax
import jax.numpy as jnp
from jax.experimental import pallas as pl
from jax.experimental.pallas import tpu as pltpu

_BN_EPS = 1e-5
_MIB = 1024 * 1024


# --------------------------------------------------------------------------
# hardware-aware sizing helpers
# --------------------------------------------------------------------------
def _vmem_capacity_bytes():
    try:
        info = pltpu.get_tpu_info()
        cap = getattr(info, "vmem_capacity_bytes", None)
        if cap:
            return int(cap)
    except Exception:
        pass
    return 64 * _MIB  # conservative (v7x-sized) default


def _pick_tile_lane(hw, c, target_bytes):
    """Largest multiple of 128 dividing hw with c*tile*4 <= target_bytes."""
    budget = max(128, target_bytes // max(1, c * 4))
    t = min(hw, (budget // 128) * 128)
    t = max(t, 128)
    while hw % t != 0:
        t -= 128
    return t


def _pick_tile_h(h, w, c, target_bytes):
    """Largest legal H tile (multiple of 8 dividing h, or h itself) whose
    (C, TILE_H, W) f32 block stays under target_bytes."""
    cands = sorted({d for d in range(8, h + 1, 8) if h % d == 0} | {h})
    best = None
    for d in cands:
        if c * d * w * 4 <= target_bytes:
            best = d
    return best if best is not None else cands[0]


# --------------------------------------------------------------------------
# kernels
# --------------------------------------------------------------------------
def _bn_fused_resident_kernel(gamma_ref, beta_ref, x_ref, o_ref, *, inv_m,
                              activation):
    """Single-pass path: whole (N, C, HW) slab resident in VMEM.

    x is read from HBM once and written once (2x traffic). Two-pass mean/var
    in f32 avoids the E[x^2]-mean^2 cancellation."""
    x = x_ref[...].astype(jnp.float32)                 # (N, C, HW)
    s = jnp.sum(x, axis=-1, keepdims=True)             # lane (XLU) reduce
    s = jnp.sum(s, axis=0, keepdims=True)              # (1, C, 1)
    mean = s * inv_m
    xc = x - mean
    v = jnp.sum(xc * xc, axis=-1, keepdims=True)
    v = jnp.sum(v, axis=0, keepdims=True)
    var = v * inv_m                                    # biased variance
    scale = gamma_ref[...] * jax.lax.rsqrt(var + _BN_EPS)
    y = xc * scale + beta_ref[...]
    if activation is not None:
        y = activation(y)
    o_ref[...] = y.astype(o_ref.dtype)


def _bn_stats_kernel(x_ref, psum_ref, psq_ref, acc_ref, acc2_ref, *, fold):
    """Streaming pass 0: partial per-channel sum / sum-of-squares.

    x_ref:            (1, C, TILE)          or (1, C, TILE_H, W)
    psum/psq_ref:     (1, C, 1)             or (1, C, 1, 1)
    acc/acc2_ref:     (C, TILE or TILE/2)   or (C, TILE_H, W)   f32 scratch
    fold=True folds two lane-halves in-register before accumulating, halving
    accumulator store/load traffic and scratch (v7x vst-slot relief)."""
    t = pl.program_id(2)

    @pl.when(t == 0)
    def _init():
        acc_ref[...] = jnp.zeros_like(acc_ref)
        acc2_ref[...] = jnp.zeros_like(acc2_ref)

    if fold:
        half = acc_ref.shape[-1]
        xl = x_ref[0, :, :half].astype(jnp.float32)
        xh = x_ref[0, :, half:].astype(jnp.float32)
        acc_ref[...] += xl + xh
        acc2_ref[...] += xl * xl + xh * xh
    else:
        xx = x_ref[0].astype(jnp.float32)
        acc_ref[...] += xx
        acc2_ref[...] += xx * xx

    @pl.when(t == pl.num_programs(2) - 1)
    def _finalize():
        s = acc_ref[...]
        q = acc2_ref[...]
        for ax in range(s.ndim - 1, 0, -1):     # reduce all spatial axes
            s = jnp.sum(s, axis=ax, keepdims=True)
            q = jnp.sum(q, axis=ax, keepdims=True)
        psum_ref[0] = s
        psq_ref[0] = q


def _bn_apply_kernel(psum_ref, psq_ref, gamma_ref, beta_ref, x_ref, o_ref, *,
                     inv_m, activation):
    """Streaming pass 1: finalize (tiny, hidden under HBM) + normalize.

    psum/psq_ref: (P, C, 1[,1]) resident partials,  gamma/beta: (C, 1[,1])
    x_ref/o_ref:  (1, C, TILE) or (1, C, TILE_H, W)."""
    ssum = jnp.sum(psum_ref[...], axis=0)              # (C, 1[,1])
    ssq = jnp.sum(psq_ref[...], axis=0)
    mean = ssum * inv_m
    var = jnp.maximum(ssq * inv_m - mean * mean, 0.0)  # biased variance
    scale = gamma_ref[...] * jax.lax.rsqrt(var + _BN_EPS)
    shift = beta_ref[...] - mean * scale
    y = x_ref[0].astype(jnp.float32) * scale + shift
    if activation is not None:
        y = activation(y)
    o_ref[0] = y.astype(o_ref.dtype)


# --------------------------------------------------------------------------
# wrapper
# --------------------------------------------------------------------------
def _batchnorm2d_pallas(x_nchw, gamma, beta, activation=None,
                        _force_streaming=False, _target_block_bytes=None):
    """x_nchw: (N, C, H, W). gamma/beta: (C,). Returns (N, C, H, W)."""
    n, c, h, w = x_nchw.shape
    hw = h * w
    m = n * hw
    inv_m = 1.0 / m
    itemsize = jnp.dtype(x_nchw.dtype).itemsize

    cap = _vmem_capacity_bytes()
    big_vmem = cap >= 100 * _MIB          # 128-MiB v5e/v6e vs 64-MiB v7x

    # ---------------- fused resident single-pass path ----------------
    resident_budget = (56 if big_vmem else 24) * _MIB
    foot = 2 * n * c * hw * itemsize + 2 * n * c * hw * 4 + 2 * _MIB
    if (not _force_streaming) and foot <= resident_budget:
        res_limit = int(min((100 if big_vmem else 44) * _MIB,
                            max(32 * _MIB, foot + 8 * _MIB)))
        g3 = gamma.astype(jnp.float32).reshape(1, c, 1)
        b3 = beta.astype(jnp.float32).reshape(1, c, 1)
        out3 = pl.pallas_call(
            functools.partial(_bn_fused_resident_kernel, inv_m=inv_m,
                              activation=activation),
            out_shape=jax.ShapeDtypeStruct((n, c, hw), x_nchw.dtype),
            compiler_params=pltpu.CompilerParams(vmem_limit_bytes=res_limit),
        )(g3, b3, x_nchw.reshape(n, c, hw))
        return out3.reshape(n, c, h, w)

    # ---------------- two-pass streaming path ----------------
    target = _target_block_bytes
    if target is None:
        target = (6 if big_vmem else 3) * _MIB

    if hw % 128 == 0:
        xv = x_nchw.reshape(n, c, hw)                 # free reshape
        tile = _pick_tile_lane(hw, c, target)
        sblk = (tile,)
        n_tiles = hw // tile
        fold = (tile % 256 == 0)
        acc_sblk = (tile // 2,) if fold else (tile,)
    else:
        # non-128-multiple HW: tile over H, keep W as the full lane extent
        xv = x_nchw
        tile_h = _pick_tile_h(h, w, c, target)
        sblk = (tile_h, w)
        n_tiles = h // tile_h
        fold = False
        acc_sblk = sblk
    sp_rank = len(sblk)

    # megacore balance (v7x: 2 TCs): split the spatial-tile axis when N small
    hw_outer = 1
    if n < 4 and n_tiles % 2 == 0 and n_tiles >= 4:
        hw_outer = 2
        if n * hw_outer < 4 and n_tiles % 4 == 0 and n_tiles >= 8:
            hw_outer = 4
    n_inner = n_tiles // hw_outer
    num_part = n * hw_outer

    tile_elems = c
    for d in sblk:
        tile_elems *= d
    acc_elems = c
    for d in acc_sblk:
        acc_elems *= d
    in_blk = tile_elems * itemsize
    pass0_bytes = 2 * in_blk + 2 * acc_elems * 4
    pass1_bytes = 4 * in_blk + 2 * num_part * c * 4
    vmem_limit = int(min(max(max(pass0_bytes, pass1_bytes) + 4 * _MIB,
                             16 * _MIB),
                         (88 if big_vmem else 40) * _MIB))

    part_shape = (num_part, c) + (1,) * sp_rank

    def x_map0(i, j, t):
        return (i, 0, j * n_inner + t) + (0,) * (sp_rank - 1)

    def p_map0(i, j, t):
        return (i * hw_outer + j, 0) + (0,) * sp_rank

    # ---- pass 0: streaming per-channel partial stats ----
    psum, psq = pl.pallas_call(
        functools.partial(_bn_stats_kernel, fold=fold),
        out_shape=(jax.ShapeDtypeStruct(part_shape, jnp.float32),
                   jax.ShapeDtypeStruct(part_shape, jnp.float32)),
        grid=(n, hw_outer, n_inner),
        in_specs=[pl.BlockSpec((1, c) + sblk, x_map0)],
        out_specs=(pl.BlockSpec((1, c) + (1,) * sp_rank, p_map0),
                   pl.BlockSpec((1, c) + (1,) * sp_rank, p_map0)),
        scratch_shapes=[pltpu.VMEM((c,) + acc_sblk, jnp.float32),
                        pltpu.VMEM((c,) + acc_sblk, jnp.float32)],
        compiler_params=pltpu.CompilerParams(
            dimension_semantics=("parallel", "parallel", "arbitrary"),
            vmem_limit_bytes=vmem_limit),
    )(xv)

    # ---- pass 1: finalize (in-kernel) + normalize (+ fused activation) ----
    g_shape = (c,) + (1,) * sp_rank
    gv = gamma.astype(jnp.float32).reshape(g_shape)
    bv = beta.astype(jnp.float32).reshape(g_shape)

    def x_map1(i, t):
        return (i, 0, t) + (0,) * (sp_rank - 1)

    def const_map_part(i, t):
        return (0,) * (2 + sp_rank)

    def const_map_g(i, t):
        return (0,) * (1 + sp_rank)

    out = pl.pallas_call(
        functools.partial(_bn_apply_kernel, inv_m=inv_m, activation=activation),
        out_shape=jax.ShapeDtypeStruct(xv.shape, x_nchw.dtype),
        grid=(n, n_tiles),
        in_specs=[pl.BlockSpec(part_shape, const_map_part),
                  pl.BlockSpec(part_shape, const_map_part),
                  pl.BlockSpec(g_shape, const_map_g),
                  pl.BlockSpec(g_shape, const_map_g),
                  pl.BlockSpec((1, c) + sblk, x_map1)],
        out_specs=pl.BlockSpec((1, c) + sblk, x_map1),
        compiler_params=pltpu.CompilerParams(
            dimension_semantics=("parallel", "parallel"),
            vmem_limit_bytes=vmem_limit),
    )(psum, psq, gv, bv, xv)

    return out.reshape(n, c, h, w)


# --------------------------------------------------------------------------
# module wrapper
# --------------------------------------------------------------------------
class MultiNormLayerPallas:
    """JAX/Pallas port of MultiNormLayer(out_channels, output_strides, norm='BN')."""

    def __init__(self, out_channels, output_strides, norm="BN", activation=None,
                 key=None):
        self.norm = norm
        self.activation = activation  # optional callable (e.g. jax.nn.relu)
        self.params = {}
        if norm in ("BN", "SyncBN"):
            key = key if key is not None else jax.random.PRNGKey(0)
            for s in output_strides:
                key, kg, kb = jax.random.split(key, 3)
                # Deterministic synthetic affine params per stride.
                gamma = 1.0 + 0.1 * jax.random.normal(kg, (out_channels,), jnp.float32)
                beta = 0.1 * jax.random.normal(kb, (out_channels,), jnp.float32)
                self.params["bn_s" + str(s)] = (gamma, beta)
        elif norm == "GN":
            # TODO(synk): GroupNorm(32, C) branch not ported.
            raise NotImplementedError
        # norm == '' -> identity, no params

    def __call__(self, x, stride):
        if self.norm in ("BN", "SyncBN"):
            gamma, beta = self.params["bn_s" + str(stride)]
            # activation fused into the kernel epilogue
            return _batchnorm2d_pallas(x, gamma, beta, activation=self.activation)
        elif self.norm == "":
            out = x
        else:
            raise NotImplementedError
        if self.activation is not None:
            out = self.activation(out)
        return out


def _reference_bn(x, gamma, beta, activation=None):
    # Plain-JAX training-mode BatchNorm2d reference (NCHW).
    mean = jnp.mean(x, axis=(0, 2, 3), keepdims=True)
    var = jnp.mean((x - mean) ** 2, axis=(0, 2, 3), keepdims=True)
    xn = (x - mean) * jax.lax.rsqrt(var + _BN_EPS)
    y = xn * gamma.reshape(1, -1, 1, 1) + beta.reshape(1, -1, 1, 1)
    if activation is not None:
        y = activation(y)
    return y


if __name__ == "__main__":
    key = jax.random.PRNGKey(0)
    kx, kp, kx2, kx3 = jax.random.split(key, 4)

    N, C, H, W = 2, 4, 16, 16
    output_strides = [4, 8]
    x = jax.random.normal(kx, (N, C, H, W), jnp.float32)

    # default path: BN, no activation (fused resident single-pass kernel)
    layer = MultiNormLayerPallas(C, output_strides, norm="BN", activation=None, key=kp)
    out = jax.block_until_ready(layer(x, stride=4))
    gamma, beta = layer.params["bn_s4"]
    ref = _reference_bn(x, gamma, beta)
    assert out.shape == x.shape and out.dtype == x.dtype
    assert jnp.allclose(out, ref, atol=1e-4, rtol=1e-4)

    # second stride + fused activation (still resident)
    layer_act = MultiNormLayerPallas(C, output_strides, norm="BN",
                                     activation=jax.nn.relu, key=kp)
    out2 = jax.block_until_ready(layer_act(x, stride=8))
    g2, b2 = layer_act.params["bn_s8"]
    ref2 = _reference_bn(x, g2, b2, activation=jax.nn.relu)
    assert jnp.allclose(out2, ref2, atol=1e-4, rtol=1e-4)

    # streaming 3-D path (HW % 128 == 0): multi-tile, lane-folded accumulators,
    # HW-outer split for megacore balance at N == 1
    gs = 1.0 + 0.1 * jnp.arange(8, dtype=jnp.float32)
    bs = 0.05 * jnp.arange(8, dtype=jnp.float32)
    xs = 1.5 * jax.random.normal(kx2, (1, 8, 64, 128), jnp.float32) + 0.7
    outs = jax.block_until_ready(
        _batchnorm2d_pallas(xs, gs, bs, activation=jax.nn.relu,
                            _force_streaming=True,
                            _target_block_bytes=64 * 1024))
    refs = _reference_bn(xs, gs, bs, activation=jax.nn.relu)
    assert jnp.allclose(outs, refs, atol=1e-3, rtol=1e-3)

    # streaming 4-D fallback path (HW % 128 != 0): H-tiled blocks
    xs4 = jax.random.normal(kx3, (2, 8, 16, 12), jnp.float32) - 0.3
    outs4 = jax.block_until_ready(
        _batchnorm2d_pallas(xs4, gs, bs, activation=None,
                            _force_streaming=True,
                            _target_block_bytes=4 * 1024))
    refs4 = _reference_bn(xs4, gs, bs)
    assert jnp.allclose(outs4, refs4, atol=1e-3, rtol=1e-3)

    # same unaligned shape through the resident path (masked lane reductions)
    outs4r = jax.block_until_ready(_batchnorm2d_pallas(xs4, gs, bs))
    assert jnp.allclose(outs4r, refs4, atol=1e-4, rtol=1e-4)

    print("KERNEL_OK")
</pallas_src>

<mosaic_0001>
module attributes {stable_mosaic.version = 11 : i64} {
  func.func @_bn_fused_resident_kernel(%arg0: memref<1x4x1xf32, #tpu.memory_space<vmem>>, %arg1: memref<1x4x1xf32, #tpu.memory_space<vmem>>, %arg2: memref<2x4x256xf32, #tpu.memory_space<vmem>>, %arg3: memref<2x4x256xf32, #tpu.memory_space<vmem>>) attributes {dimension_semantics = [], scalar_prefetch = 0 : i64, scratch_operands = 0 : i64, tpu.core_type = #tpu.core_type<tc>} {
    %c0 = arith.constant 0 : index
    %c0_0 = arith.constant 0 : index
    %c0_1 = arith.constant 0 : index
    %0 = vector.load %arg2[%c0, %c0_0, %c0_1] : memref<2x4x256xf32, #tpu.memory_space<vmem>>, vector<2x4x256xf32>
    %cst = arith.constant dense<0.000000e+00> : vector<2x4xf32>
    %1 = vector.multi_reduction <add>, %0, %cst [2] : vector<2x4x256xf32> to vector<2x4xf32>
    %2 = vector.shape_cast %1 : vector<2x4xf32> to vector<2x4x1xf32>
    %cst_2 = arith.constant dense<0.000000e+00> : vector<4x1xf32>
    %3 = vector.multi_reduction <add>, %2, %cst_2 [0] : vector<2x4x1xf32> to vector<4x1xf32>
    %4 = vector.shape_cast %3 : vector<4x1xf32> to vector<1x4x1xf32>
    %cst_3 = arith.constant 0.001953125 : f32
    %5 = vector.broadcast %cst_3 : f32 to vector<1x4x1xf32>
    %6 = arith.mulf %4, %5 : vector<1x4x1xf32>
    %7 = vector.broadcast %6 : vector<1x4x1xf32> to vector<2x4x256xf32>
    %8 = arith.subf %0, %7 : vector<2x4x256xf32>
    %9 = arith.mulf %8, %8 : vector<2x4x256xf32>
    %cst_4 = arith.constant dense<0.000000e+00> : vector<2x4xf32>
    %10 = vector.multi_reduction <add>, %9, %cst_4 [2] : vector<2x4x256xf32> to vector<2x4xf32>
    %11 = vector.shape_cast %10 : vector<2x4xf32> to vector<2x4x1xf32>
    %cst_5 = arith.constant dense<0.000000e+00> : vector<4x1xf32>
    %12 = vector.multi_reduction <add>, %11, %cst_5 [0] : vector<2x4x1xf32> to vector<4x1xf32>
    %13 = vector.shape_cast %12 : vector<4x1xf32> to vector<1x4x1xf32>
    %cst_6 = arith.constant 0.001953125 : f32
    %14 = vector.broadcast %cst_6 : f32 to vector<1x4x1xf32>
    %15 = arith.mulf %13, %14 : vector<1x4x1xf32>
    %c0_7 = arith.constant 0 : index
    %c0_8 = arith.constant 0 : index
    %c0_9 = arith.constant 0 : index
    %16 = vector.load %arg0[%c0_7, %c0_8, %c0_9] : memref<1x4x1xf32, #tpu.memory_space<vmem>>, vector<1x4x1xf32>
    %cst_10 = arith.constant 9.99999974E-6 : f32
    %17 = vector.broadcast %cst_10 : f32 to vector<1x4x1xf32>
    %18 = arith.addf %15, %17 : vector<1x4x1xf32>
    %19 = math.rsqrt %18 : vector<1x4x1xf32>
    %20 = arith.mulf %16, %19 : vector<1x4x1xf32>
    %21 = vector.broadcast %20 : vector<1x4x1xf32> to vector<2x4x256xf32>
    %22 = arith.mulf %8, %21 : vector<2x4x256xf32>
    %c0_11 = arith.constant 0 : index
    %c0_12 = arith.constant 0 : index
    %c0_13 = arith.constant 0 : index
    %23 = vector.load %arg1[%c0_11, %c0_12, %c0_13] : memref<1x4x1xf32, #tpu.memory_space<vmem>>, vector<1x4x1xf32>
    %24 = vector.broadcast %23 : vector<1x4x1xf32> to vector<2x4x256xf32>
    %25 = arith.addf %22, %24 : vector<2x4x256xf32>
    %c0_14 = arith.constant 0 : index
    %c0_15 = arith.constant 0 : index
    %c0_16 = arith.constant 0 : index
    %26 = vector.load %arg3[%c0_14, %c0_15, %c0_16] : memref<2x4x256xf32, #tpu.memory_space<vmem>>, vector<2x4x256xf32>
    tpu.vector_store %arg3[%c0_14, %c0_15, %c0_16], %25 {strides = array<i32>} : memref<2x4x256xf32, #tpu.memory_space<vmem>>, vector<2x4x256xf32>,
    return
  }
}

</mosaic_0001>

<bundles_post_ra>
// kernel: tpu_custom_call.1
= control target key start
LH: loop header
LB: loop body
LE: loop exit
PB: predicated region body
PF: predicated region fallthrough
CT: control target
= control target key end

     0   :  { %vm23_vm0 = vcmask 1043456   ;;  %s218_s0 = inlined_call_operand.vmem [shape: f32[1,4,1], index: 0, kind: input, shape index: {}]   ;;  %s219_s1 = inlined_call_operand.vmem [shape: f32[1,4,1], index: 1, kind: input, shape index: {}]   ;;  %s220_s2 = inlined_call_operand.vmem [shape: f32[2,4,256], index: 2, kind: input, shape index: {}]   ;;  %s221_s3 = inlined_call_operand.hbm [shape: f32[2,4,256], index: 3, kind: output, shape index: {}]  }
   0x1   :  { %v15_v0 = vld [vmem:[%s220_s2] sm:$0xff]  ;;  %v16_v1 = vld [vmem:[%s220_s2 + $0x8] sm:$0xff] }
   0x2   :  { %8 = vsyncpa [#allocation3], 0  ;;  %v19_v2 = vcombine.high %v15_v0, %v15_v0  ;;  %v24_v3 = vsel %vm23_vm0, %v15_v0, 0.0  ;;  %v20_v4 = vcombine.high %v16_v1, %v16_v1  ;;  %v29_v6 = vsel %vm23_vm0, %v16_v1, 0.0  ;;  %v89_v36 = vld [vmem:[%s219_s1] sm:$0xf] }
   0x3   :  { %v157_v10 = vmov 839922192   ;;  %v42_v12 = vlaneseq  ;;  %v158_v35 = vmov 0   ;;  %v71_v44 = vld [vmem:[%s218_s0] sm:$0xf]  ;;  %s159_s1 = smov [#allocation2]  }
   0x4   :  { %v25_v5 = vsel %vm23_vm0, %v19_v2, 0.0  ;;  %v30_v7 = vsel %vm23_vm0, %v20_v4, 0.0  ;;  %v40_v11 = vunpack.c.l.s4 %v157_v10  ;;  %127 = vset.pattern.permute.xlu0 %v158_v35  ;;  %128 = vset.pattern.permute.xlu1 %v158_v35  ;;  %s111_s19 = sshll.u32 %s159_s1, 4  ;;  %s112_s19 = int_to_ptr.vmem [resolvable:$true] %s111_s19 }
   0x5   :  { %v26_v8 = vadd.f32 %v25_v5, %v24_v3  ;;  %v31_v9 = vadd.f32 %v30_v7, %v29_v6  ;;  %v43_v15 = vshrl.u32 %v42_v12, 7  ;;  %s133_s20 = scalar_lea.vmem %s112_s19, 256  ;;  %p138_p1 = scmp.lt.s32.totalorder %s112_s19, %s112_s19 }
   0x6   :  { %v41_v14 = vunpack.c.0.s8 %v40_v11  ;;  %p134_p0 = scmp.ne.s32.totalorder %s112_s19, %s133_s20  ;;  %p139_p2 = scmp.lt.s32.totalorder %s133_s20, %s133_s20 }
   0x7   :  { %27 = vadd.xlane.f32.xlu0 %v26_v8 }
   0x8   :  { %v44_v19 = vsub.s32 %v41_v14, %v43_v15  ;;  %p140_p3 = por %p139_p2, %p138_p1 }
   0xa   :  { %p141_p4 = pnand %p140_p3, %p134_p0 }
   0xb   :  { %32 = vadd.xlane.f32.xlu0 %v31_v9 }
  0x94   :  { %v28_v13 = vpop.xlane.xlu0 %27 }
  0x95   :  { %v34_v17 = vsel %vm23_vm0, %v28_v13, 0.0 }
  0x98   :  { %v33_v16 = vpop.xlane.xlu0 %32 }
  0x99   :  { %v35_v18 = vsel %vm23_vm0, %v33_v16, 0.0 }
  0x9a   :  { %v36_v20 = vadd.f32 %v35_v18, %v34_v17 }
  0x9c   :  { %v37_v21 = vmul.f32 0.001953125, %v36_v20 }
  0x9e   :  { %v45_v22 = vrot.slane %v37_v21, %v44_v19 }
  0xa0   :  { %v48_v23 = vsub.f32 %v16_v1, %v45_v22  ;;  %v47_v24 = vsub.f32 %v15_v0, %v45_v22 }
  0xa2   :  { %v49_v25 = vmul.f32 %v47_v24, %v47_v24  ;;  %v50_v26 = vmul.f32 %v48_v23, %v48_v23 }
  0xa4   :  { %v53_v27 = vcombine.high %v49_v25, %v49_v25  ;;  %v54_v28 = vcombine.high %v50_v26, %v50_v26  ;;  %v57_v29 = vsel %vm23_vm0, %v49_v25, 0.0  ;;  %v62_v33 = vsel %vm23_vm0, %v50_v26, 0.0 }
  0xa6   :  { %v58_v30 = vsel %vm23_vm0, %v53_v27, 0.0  ;;  %v63_v32 = vsel %vm23_vm0, %v54_v28, 0.0 }
  0xa7   :  { %v59_v31 = vadd.f32 %v58_v30, %v57_v29  ;;  %v64_v34 = vadd.f32 %v63_v32, %v62_v33 }
  0xa9   :  { %60 = vadd.xlane.f32.xlu1 %v59_v31 }
  0xad   :  { %65 = vadd.xlane.f32.xlu1 %v64_v34 }
  0xbe   :  { %92 = vperm.xlu1 %128, %v89_v36  }
 0x136   :  { %v61_v37 = vpop.xlane.xlu1 %60 }
 0x137   :  { %v67_v39 = vsel %vm23_vm0, %v61_v37, 0.0 }
 0x13a   :  { %v66_v38 = vpop.xlane.xlu1 %65 }
 0x13b   :  { %v68_v40 = vsel %vm23_vm0, %v66_v38, 0.0 }
 0x13c   :  { %v69_v41 = vadd.f32 %v68_v40, %v67_v39 }
 0x13e   :  { %v70_v42 = vmul.f32 0.001953125, %v69_v41  ;;  %v93_v47 = vpop.permute.xlu1 %92 }
 0x13f   :  { %v100_v50 = vrot.slane %v93_v47, %v44_v19 }
 0x140   :  { %v72_v43 = vadd.f32 1e-05, %v70_v42 }
 0x142   :  { %131 = vrsqrt.f32 %v72_v43 }
 0x14c   :  { %v132_v45 = vpop.eup %131 }
 0x14d   :  { %v74_v46 = vmul.f32 %v132_v45, %v71_v44 }
 0x14f   :  { %77 = vperm.xlu0 %127, %v74_v46  }
 0x1ce   :  { %v78_v48 = vpop.permute.xlu0 %77 }
 0x1cf   :  { %v85_v49 = vrot.slane %v78_v48, %v44_v19 }
 0x1d1   :  { %v87_v51 = vmul.f32 %v85_v49, %v47_v24  ;;  %v88_v52 = vmul.f32 %v85_v49, %v48_v23 }
 0x1d3   :  { %v102_v53 = vadd.f32 %v100_v50, %v87_v51  ;;  %v103_v54 = vadd.f32 %v100_v50, %v88_v52 }
 0x1d5   :  { %104 = vst [vmem:[#allocation2] sm:$0xff] %v102_v53  ;;  %105 = vst [vmem:[#allocation2 + $0x8] sm:$0xff] %v103_v54 }
 0x1d6   :  { %144 = shalt.err (!%p141_p4)
}
 0x1d7   :  { %s145_s22 = scalar_lea.hbm %s221_s3, 256 }
 0x1d8   :  { %p146_p5 = scmp.ne.s32.totalorder %s221_s3, %s145_s22  ;;  %p149_p6 = scmp.lt.u32.totalorder %s145_s22, %s221_s3 }
 0x1da   :  { %p151_p7 = pnand %p149_p6, %p146_p5 }
 0x1dc   :  { %154 = shalt.err (!%p151_p7)
}
 0x1dd   :  { %s160_s27 = smov 128   ;;  %s161_s28 = smov 8  }
 0x1de   :  { %117 = dma.vmem_to_hbm [thread:$0]  %s112_s19, 256, %s221_s3, [#allocation3], %s160_s27, %s160_s27, %s161_s28  }
 0x1df   :  { %155 = dma.done.wait [#allocation3], 256  }
 0x1e0   :  { %156 = vsyncadd [#allocation3], 4294967040 }
 0x1e1   :  { %121 = vsyncpa [#allocation3], 1 }

</bundles_post_ra>
